<compile_context>
chip_gen: v5e
topology: v5e:2x2
jax: 0.10.0
libtpu: 0.0.40
codegen_flags: <defaults>
</compile_context>

<pallas_src>
import functools

import jax
import jax.numpy as jnp
from jax.experimental import pallas as pl
from jax.experimental.pallas import tpu as pltpu


def _fullmodel_kernel(x_ref, wt_ref, b_ref, lbl_ref, logits_ref, psum_ref,
                      *, hw, tp):
    # model: 1x1 conv == pointwise channel matmul.
    # (Ncls, TP) = (Ncls, Cin) @ (Cin, TP); pixels on lanes, classes on sublanes.
    logits = jnp.dot(wt_ref[...], x_ref[...],
                     preferred_element_type=jnp.float32)
    logits = logits + b_ref[...].astype(jnp.float32)       # (Ncls, 1) sublane bcast
    logits_ref[...] = logits.astype(logits_ref.dtype)

    # loss: per-pixel softmax cross-entropy, reduced over the class/sublane axis.
    m = jnp.max(logits, axis=0, keepdims=True)                          # (1, TP)
    lse = m + jnp.log(jnp.sum(jnp.exp(logits - m), axis=0, keepdims=True))

    # Gather the true-class logit without a one-hot from HBM: iota==label select.
    cls_ids = jax.lax.broadcasted_iota(jnp.int32, logits.shape, 0)      # (Ncls, TP)
    true_logit = jnp.sum(
        jnp.where(cls_ids == lbl_ref[...], logits, 0.0),
        axis=0, keepdims=True)                                          # (1, TP)
    nll = lse - true_logit                                              # (1, TP)

    if hw % tp != 0:  # static: only needed when the last pixel tile is ragged
        t = pl.program_id(1)
        pix = t * tp + jax.lax.broadcasted_iota(jnp.int32, nll.shape, 1)
        nll = jnp.where(pix < hw, nll, 0.0)   # drop pad-lane garbage from the loss

    # Fused loss reduction: one scalar per (image, tile), splatted into a full
    # (8,128) tile so the store is a single unmasked lane-dense vreg write.
    tile_sum = jnp.sum(nll, axis=1, keepdims=True)                      # (1, 1)
    psum_ref[...] = jnp.broadcast_to(tile_sum, psum_ref.shape)


def fullmodel_forward(inputs_nchw, labels_nhw, weight, bias, *,
                      vmem_budget_bytes=16 << 20,   # tile-sizing budget (2x headroom)
                      vmem_limit_bytes=32 << 20,    # safe on v5e/v6e/v7x
                      tp_override=None):
    """Returns (loss[1], outputs[N, Ncls, H, W]) mirroring FullModel.forward.

    weight: (Cin, Ncls) 1x1-conv weight, bias: (Ncls,).
    """
    N, Cin, H, W = inputs_nchw.shape
    Ncls = weight.shape[1]
    HW = H * W
    P = N * HW

    # Free reshapes only; no wrapper-side dtype cast (keeps one x stream in HBM).
    x = inputs_nchw.reshape(N, Cin, HW)
    lbl = labels_nhw.reshape(N, 1, HW).astype(jnp.int32)
    wt = jnp.transpose(weight).astype(x.dtype)       # (Ncls, Cin), tiny, VMEM resident
    b2d = bias.reshape(Ncls, 1)                      # (Ncls, 1), tiny
    out_dtype = x.dtype

    xb = jnp.dtype(x.dtype).itemsize
    ob = jnp.dtype(out_dtype).itemsize
    # Double-buffered per-lane footprint: x + labels + logits (weights/psum ~0).
    bytes_per_lane = 2 * (Cin * xb + 4 + Ncls * ob)
    tp_budget = max(128, (vmem_budget_bytes // bytes_per_lane // 128) * 128)

    if tp_override is not None:
        tp = min(int(tp_override), HW)
        if tp < HW:
            tp = max(128, (tp // 128) * 128)         # lane-aligned tiles only
    else:
        tp = HW if HW <= tp_budget else tp_budget
    num_tiles = pl.cdiv(HW, tp)

    # v7x has 2 TensorCores sharing the grid: make sure there are >=2 steps.
    if tp_override is None and N * num_tiles < 2 and HW >= 256:
        tp = max(128, ((HW // 2 + 127) // 128) * 128)
        num_tiles = pl.cdiv(HW, tp)

    assert tp == HW or tp % 128 == 0

    grid_spec = pltpu.PrefetchScalarGridSpec(
        num_scalar_prefetch=0,
        grid=(N, num_tiles),
        in_specs=[
            # x: (N, Cin, HW) -> kernel sees (Cin, TP)
            pl.BlockSpec((None, Cin, tp), lambda n, t: (n, 0, t)),
            # weight.T / bias: constant index_map -> stay VMEM-resident
            pl.BlockSpec((Ncls, Cin), lambda n, t: (0, 0)),
            pl.BlockSpec((Ncls, 1), lambda n, t: (0, 0)),
            # labels: (N, 1, HW) int32 -> kernel sees (1, TP)
            pl.BlockSpec((None, 1, tp), lambda n, t: (n, 0, t)),
        ],
        out_specs=[
            # logits: (N, Ncls, HW) -> kernel writes (Ncls, TP), lane-dense
            pl.BlockSpec((None, Ncls, tp), lambda n, t: (n, 0, t)),
            # fused-loss partial sums: one (8,128) tile per grid step
            pl.BlockSpec((None, None, 8, 128), lambda n, t: (n, t, 0, 0)),
        ],
    )

    cost = pl.CostEstimate(
        flops=2 * P * Cin * Ncls,
        transcendentals=P * (Ncls + 1),
        bytes_accessed=int(N * Cin * HW * xb + N * HW * 4
                           + Ncls * Cin * xb + Ncls * 4
                           + N * Ncls * HW * ob
                           + N * num_tiles * 8 * 128 * 4),
    )

    logits, psum = pl.pallas_call(
        functools.partial(_fullmodel_kernel, hw=HW, tp=tp),
        grid_spec=grid_spec,
        out_shape=(
            jax.ShapeDtypeStruct((N, Ncls, HW), out_dtype),
            jax.ShapeDtypeStruct((N, num_tiles, 8, 128), jnp.float32),
        ),
        compiler_params=pltpu.CompilerParams(
            dimension_semantics=("parallel", "parallel"),
            vmem_limit_bytes=vmem_limit_bytes),
        cost_estimate=cost,
    )(x, wt, b2d, lbl)

    # (N, Ncls, HW) -> NCHW for free; loss = mean of the fused per-tile sums.
    outputs = logits.reshape(N, Ncls, H, W)
    loss = (jnp.sum(psum[:, :, 0, 0]) / P).reshape(1)   # torch.unsqueeze(loss, 0)
    return loss, outputs


def _reference(inputs, labels, weight, bias):
    n, cin, h, w = inputs.shape
    x_flat = jnp.transpose(inputs, (0, 2, 3, 1)).reshape(-1, cin).astype(jnp.float32)
    logits = x_flat @ weight.astype(jnp.float32) + bias.astype(jnp.float32)
    nll = (jax.nn.logsumexp(logits, axis=-1)
           - jnp.take_along_axis(logits, labels.reshape(-1, 1), axis=-1)[:, 0])
    loss = jnp.mean(nll)
    outs = jnp.transpose(logits.reshape(n, h, w, -1), (0, 3, 1, 2))
    return loss, outs


if __name__ == "__main__":
    key = jax.random.PRNGKey(0)
    k_x, k_lbl, k_w, k_b = jax.random.split(key, 4)

    # Case 1: default tiling (full-row tile, grid = (N, 1) = 2 steps).
    N, Cin, H, W = 2, 4, 16, 16
    Ncls = 8
    inputs = jax.random.normal(k_x, (N, Cin, H, W), dtype=jnp.float32)
    labels = jax.random.randint(k_lbl, (N, H, W), 0, Ncls, dtype=jnp.int32)
    weight = 0.1 * jax.random.normal(k_w, (Cin, Ncls), dtype=jnp.float32)
    bias = 0.01 * jax.random.normal(k_b, (Ncls,), dtype=jnp.float32)

    loss, outputs = fullmodel_forward(inputs, labels, weight, bias)
    jax.block_until_ready((loss, outputs))
    ref_loss, ref_out = _reference(inputs, labels, weight, bias)
    assert loss.shape == (1,) and outputs.shape == (N, Ncls, H, W)
    assert jnp.allclose(loss[0], ref_loss, atol=1e-4, rtol=1e-5)
    assert jnp.allclose(outputs, ref_out, atol=1e-4, rtol=1e-5)

    # Case 2: multi-tile pixel grid with a ragged tail (HW=324, tp=128 -> 3 tiles),
    # exercising the in-kernel tail mask for the fused loss.
    N2, Cin2, H2, W2, Ncls2 = 1, 3, 18, 18, 5
    inputs2 = jax.random.normal(k_x, (N2, Cin2, H2, W2), dtype=jnp.float32)
    labels2 = jax.random.randint(k_lbl, (N2, H2, W2), 0, Ncls2, dtype=jnp.int32)
    weight2 = 0.1 * jax.random.normal(k_w, (Cin2, Ncls2), dtype=jnp.float32)
    bias2 = 0.01 * jax.random.normal(k_b, (Ncls2,), dtype=jnp.float32)

    loss2, out2 = fullmodel_forward(inputs2, labels2, weight2, bias2, tp_override=128)
    jax.block_until_ready((loss2, out2))
    ref_loss2, ref_out2 = _reference(inputs2, labels2, weight2, bias2)
    assert loss2.shape == (1,) and out2.shape == (N2, Ncls2, H2, W2)
    assert jnp.allclose(loss2[0], ref_loss2, atol=1e-4, rtol=1e-5)
    assert jnp.allclose(out2, ref_out2, atol=1e-4, rtol=1e-5)

    # TODO(synk): torch.nn.CrossEntropyLoss extras (ignore_index, class weights)
    # are not modeled; this mirrors plain mean pixel-wise CE.
    print("KERNEL_OK")
</pallas_src>

<mosaic_0001>
module attributes {stable_mosaic.version = 11 : i64} {
  func.func @_fullmodel_kernel(%arg0: i32, %arg1: i32, %arg2: memref<1x4x256xf32, #tpu.memory_space<vmem>>, %arg3: memref<8x4xf32, #tpu.memory_space<vmem>>, %arg4: memref<8x1xf32, #tpu.memory_space<vmem>>, %arg5: memref<1x1x256xi32, #tpu.memory_space<vmem>>, %arg6: memref<1x8x256xf32, #tpu.memory_space<vmem>>, %arg7: memref<1x1x8x128xf32, #tpu.memory_space<vmem>>) attributes {dimension_semantics = [#tpu.dimension_semantics<parallel>, #tpu.dimension_semantics<parallel>], iteration_bounds = array<i64: 2, 1>, scalar_prefetch = 0 : i64, scratch_operands = 0 : i64, tpu.core_type = #tpu.core_type<tc>, window_params = [{transform_indices = @transform_0, window_bounds = array<i64: 1, 4, 256>}, {pipeline_mode = #tpu.pipeline_mode<synchronous>, transform_indices = @transform_1, window_bounds = array<i64: 8, 4>}, {pipeline_mode = #tpu.pipeline_mode<synchronous>, transform_indices = @transform_2, window_bounds = array<i64: 8, 1>}, {transform_indices = @transform_3, window_bounds = array<i64: 1, 1, 256>}, {transform_indices = @transform_4, window_bounds = array<i64: 1, 8, 256>}, {transform_indices = @transform_5, window_bounds = array<i64: 1, 1, 8, 128>}]} {
    %c0 = arith.constant 0 : index
    %c0_0 = arith.constant 0 : index
    %0 = vector.load %arg3[%c0, %c0_0] : memref<8x4xf32, #tpu.memory_space<vmem>>, vector<8x4xf32>
    %c0_1 = arith.constant 0 : index
    %c0_2 = arith.constant 0 : index
    %c0_3 = arith.constant 0 : index
    %1 = vector.load %arg2[%c0_1, %c0_2, %c0_3] : memref<1x4x256xf32, #tpu.memory_space<vmem>>, vector<1x4x256xf32>
    %2 = vector.shape_cast %1 : vector<1x4x256xf32> to vector<4x256xf32>
    %cst = arith.constant dense<0.000000e+00> : vector<8x256xf32>
    %3 = tpu.matmul %0, %2, %cst {dimension_numbers = #tpu.dot_dimension_numbers<[1], [0], [0], [1], [0, 0, 1, 1], [], []>} : vector<8x4xf32>, vector<4x256xf32>, vector<8x256xf32> -> vector<8x256xf32>
    %c0_4 = arith.constant 0 : index
    %c0_5 = arith.constant 0 : index
    %4 = vector.load %arg4[%c0_4, %c0_5] : memref<8x1xf32, #tpu.memory_space<vmem>>, vector<8x1xf32>
    %5 = vector.broadcast %4 : vector<8x1xf32> to vector<8x256xf32>
    %6 = arith.addf %3, %5 : vector<8x256xf32>
    %c0_6 = arith.constant 0 : index
    %c0_7 = arith.constant 0 : index
    %c0_8 = arith.constant 0 : index
    %7 = vector.load %arg6[%c0_6, %c0_7, %c0_8] : memref<1x8x256xf32, #tpu.memory_space<vmem>>, vector<1x8x256xf32>
    %8 = vector.shape_cast %7 : vector<1x8x256xf32> to vector<8x256xf32>
    %9 = vector.shape_cast %6 : vector<8x256xf32> to vector<1x8x256xf32>
    tpu.vector_store %arg6[%c0_6, %c0_7, %c0_8], %9 {strides = array<i32>} : memref<1x8x256xf32, #tpu.memory_space<vmem>>, vector<1x8x256xf32>,
    %cst_9 = arith.constant dense<0xFF800000> : vector<256xf32>
    %10 = vector.multi_reduction <maximumf>, %6, %cst_9 [0] : vector<8x256xf32> to vector<256xf32>
    %11 = vector.shape_cast %10 : vector<256xf32> to vector<1x256xf32>
    %12 = vector.broadcast %11 : vector<1x256xf32> to vector<8x256xf32>
    %13 = arith.subf %6, %12 : vector<8x256xf32>
    %14 = math.exp %13 : vector<8x256xf32>
    %cst_10 = arith.constant dense<0.000000e+00> : vector<256xf32>
    %15 = vector.multi_reduction <add>, %14, %cst_10 [0] : vector<8x256xf32> to vector<256xf32>
    %16 = vector.shape_cast %15 : vector<256xf32> to vector<1x256xf32>
    %17 = math.log %16 : vector<1x256xf32>
    %18 = arith.addf %11, %17 : vector<1x256xf32>
    %19 = tpu.iota {dimensions = array<i32: 0>} : vector<8x256xi32>
    %c0_11 = arith.constant 0 : index
    %c0_12 = arith.constant 0 : index
    %c0_13 = arith.constant 0 : index
    %20 = vector.load %arg5[%c0_11, %c0_12, %c0_13] : memref<1x1x256xi32, #tpu.memory_space<vmem>>, vector<1x1x256xi32>
    %21 = vector.shape_cast %20 : vector<1x1x256xi32> to vector<1x256xi32>
    %22 = vector.broadcast %21 : vector<1x256xi32> to vector<8x256xi32>
    %23 = arith.cmpi eq, %19, %22 : vector<8x256xi32>
    %cst_14 = arith.constant 0.000000e+00 : f32
    %24 = vector.broadcast %cst_14 : f32 to vector<8x256xf32>
    %25 = arith.select %23, %6, %24 : vector<8x256xi1>, vector<8x256xf32>
    %cst_15 = arith.constant dense<0.000000e+00> : vector<256xf32>
    %26 = vector.multi_reduction <add>, %25, %cst_15 [0] : vector<8x256xf32> to vector<256xf32>
    %27 = vector.shape_cast %26 : vector<256xf32> to vector<1x256xf32>
    %28 = arith.subf %18, %27 : vector<1x256xf32>
    %cst_16 = arith.constant dense<0.000000e+00> : vector<1xf32>
    %29 = vector.multi_reduction <add>, %28, %cst_16 [1] : vector<1x256xf32> to vector<1xf32>
    %30 = vector.shape_cast %29 : vector<1xf32> to vector<1x1xf32>
    %31 = vector.shape_cast %30 : vector<1x1xf32> to vector<1x1xf32>
    %32 = vector.broadcast %31 : vector<1x1xf32> to vector<8x128xf32>
    %c0_17 = arith.constant 0 : index
    %c0_18 = arith.constant 0 : index
    %c0_19 = arith.constant 0 : index
    %c0_20 = arith.constant 0 : index
    %33 = vector.load %arg7[%c0_17, %c0_18, %c0_19, %c0_20] : memref<1x1x8x128xf32, #tpu.memory_space<vmem>>, vector<1x1x8x128xf32>
    %34 = vector.shape_cast %33 : vector<1x1x8x128xf32> to vector<8x128xf32>
    %35 = vector.shape_cast %32 : vector<8x128xf32> to vector<1x1x8x128xf32>
    tpu.vector_store %arg7[%c0_17, %c0_18, %c0_19, %c0_20], %35 {strides = array<i32>} : memref<1x1x8x128xf32, #tpu.memory_space<vmem>>, vector<1x1x8x128xf32>,
    return
  }
  func.func @transform_0(%arg0: i32, %arg1: i32) -> (i32, i32, i32) {
    %c0_i32 = arith.constant 0 : i32
    %c0_i32_0 = arith.constant 0 : i32
    return %arg0, %c0_i32, %arg1 : i32, i32, i32
  }
  func.func @transform_1(%arg0: i32, %arg1: i32) -> (i32, i32) {
    %c0_i32 = arith.constant 0 : i32
    %c0_i32_0 = arith.constant 0 : i32
    %c0_i32_1 = arith.constant 0 : i32
    return %c0_i32, %c0_i32_0 : i32, i32
  }
  func.func @transform_2(%arg0: i32, %arg1: i32) -> (i32, i32) {
    %c0_i32 = arith.constant 0 : i32
    %c0_i32_0 = arith.constant 0 : i32
    %c0_i32_1 = arith.constant 0 : i32
    return %c0_i32, %c0_i32_0 : i32, i32
  }
  func.func @transform_3(%arg0: i32, %arg1: i32) -> (i32, i32, i32) {
    %c0_i32 = arith.constant 0 : i32
    %c0_i32_0 = arith.constant 0 : i32
    return %arg0, %c0_i32, %arg1 : i32, i32, i32
  }
  func.func @transform_4(%arg0: i32, %arg1: i32) -> (i32, i32, i32) {
    %c0_i32 = arith.constant 0 : i32
    %c0_i32_0 = arith.constant 0 : i32
    return %arg0, %c0_i32, %arg1 : i32, i32, i32
  }
  func.func @transform_5(%arg0: i32, %arg1: i32) -> (i32, i32, i32, i32) {
    %c0_i32 = arith.constant 0 : i32
    %c0_i32_0 = arith.constant 0 : i32
    %c0_i32_1 = arith.constant 0 : i32
    return %arg0, %arg1, %c0_i32, %c0_i32_0 : i32, i32, i32, i32
  }
}

</mosaic_0001>

<bundles_post_ra>
// kernel: tpu_custom_call.1
= control target key start
LH: loop header
LB: loop body
LE: loop exit
PB: predicated region body
PF: predicated region fallthrough
CT: control target
= control target key end

     0   :  { %11 = vsyncpa [#allocation3], 0  ;;  %s969_s0 = inlined_call_operand.vmem [shape: f32[2,4,256], index: 0, kind: input, shape index: {}]   ;;  %s970_s1 = inlined_call_operand.vmem [shape: f32[8,4], index: 1, kind: input, shape index: {}]   ;;  %s971_s2 = inlined_call_operand.vmem [shape: f32[8,1], index: 2, kind: input, shape index: {}]   ;;  %s972_s3 = inlined_call_operand.vmem [shape: s32[2,1,256], index: 3, kind: input, shape index: {}]   ;;  %s973_s4 = inlined_call_operand.hbm [shape: f32[2,8,256], index: 4, kind: output, shape index: {0}]   ;;  %s974_s5 = inlined_call_operand.hbm [shape: f32[2,1,8,128], index: 5, kind: output, shape index: {1}]  }
   0x1   :  { %13 = vsyncpa [#allocation3 + $0x1], 0 }
   0x2   :  { %14 = vsyncpa [#allocation5], 0 }
   0x3   :  { %16 = vsyncpa [#allocation5 + $0x1], 0  ;;  %s826_s18 = smov 0   ;;  %s828_s19 = smov 0  }
   0x4   :  { %s830_s20 = smov 0   ;;  %s832_s21 = smov 0  }
   0x5   :  { %s834_s22 = smov 0   ;;  %s836_s23 = smov 0  }
   0x6 LB: > { %s590_s24 = sadd.s32 4294967295, %s793_s23   ;;  %s591_s25 = sadd.s32 4294967294, %s793_s23   ;;  %s793_s23 = sphi %s836_s23, %s22_s23   ;;  %s789_s22 = sphi %s834_s22, %s981_s22   ;;  %s785_s21 = sphi %s832_s21, %s980_s21   ;;  %s781_s20 = sphi %s830_s20, %s979_s20   ;;  %s777_s19 = sphi %s828_s19, %s978_s19   ;;  %s773_s18 = sphi %s826_s18, %s977_s18  }
   0x7   : > { %s34_s26 = sadd.s32 1, %s789_s22  ;;  %s141_s27 = sadd.s32 1, %s781_s20 }
   0x8   : > { %p36_p0 = scmp.ge.s32.totalorder %s34_s26, 2  ;;  %p151_p1 = scmp.ne.s32.totalorder %s781_s20, %s777_s19 }
   0x9   : > { %p152_p2 = scmp.eq.s32.totalorder %s590_s24, 1  ;;  %p157_p3 = scmp.ne.s32.totalorder %s777_s19, %s773_s18 }
   0xa   : > { %s983_s26 = smov (%p36_p0, %s34_s26), 0  ;;  %p158_p5 = scmp.eq.s32.totalorder %s591_s25, 1 }
   0xb   : > { %p866_p4 = por %p152_p2, %p151_p1  ;;  %s136_s29 = ssub.s32 %s789_s22, %s983_s26 }
   0xc   : > { %p594_p6 = scmp.ge.s32.totalorder %s793_s23, 1  ;;  %p139_p7 = scmp.eq.s32.totalorder %s136_s29, 0 }
   0xd   : > { %p873_p8 = por %p158_p5, %p157_p3  ;;  %p235_p9 = scmp.lt.s32.totalorder %s793_s23, 3 }
   0xe   : > { %s879_s6 = scalar_select %p139_p7, %s781_s20, %s141_s27  }
   0xf   : > { %p236_p10 = pnand %p594_p6, %p235_p9 }
  0x10   : > { %p281_p11 = scmp.lt.s32.totalorder (!%p236_p10), %s785_s21, 1  ;;  %s896_s16 = sand.u32 (!%p236_p10), 1, %s777_s19  }
  0x11   : > { %239 = sbr.rel (%p236_p10) target bundleno = 335 (0x14f), region = 36  ;;  %s595_s17 = sshll.u32 (!%p236_p10), %s896_s16, 4 }
  0x12   : > { %s899_s24 = scalar_lea.vmem (!%p236_p10), [#allocation2], %s595_s17  ;;  %s612_s8 = sshll.u32 (!%p236_p10), %s785_s21, 4 }
  0x13   : > { %s445_s11 = scalar_lea.hbm (!%p236_p10), %s973_s4, %s612_s8  ;;  %s447_s12 = sshll.u32 (!%p236_p10), %s899_s24, 4  ;;  %s448_s12 = int_to_ptr.vmem [resolvable:$true] %s447_s12 }
  0x14   : > { %s427_s14 = scalar_lea.sflag (!%p236_p10), [#allocation3], %s896_s16 }
  0x16   : > { %v302_v0 = vld [vmem:[%s971_s2] sm:$0xff]  ;;  %v795_v1 = vmov 0   ;;  %s886_s9 = scalar_select %p281_p11, %s785_s21, 1  ;;  %vm316_vm0 = vcmask 1043456   ;;  %vm312_vm1 = vcmask 31744   ;;  %v399_v23 = vlaneseq }
  0x17   : > { %674 = vset.pattern.permute.xlu0 %v795_v1  ;;  %v300_v3 = vld [vmem:[%s970_s1] sm:$0xff] }
  0x18   : > { %305 = vperm.xlu0 %674, %v302_v0   ;;  %s611_s10 = sshll.u32 %s886_s9, 3  ;;  %s599_s25 = sshll.u32 %s886_s9, 1  ;;  %v400_v29 = vshrl.u32 %v399_v23, 7 }
  0x19   : > { %s288_s13 = scalar_lea.vmem %s969_s0, %s611_s10  ;;  %s297_s7 = scalar_lea.vmem %s972_s3, %s599_s25 }
  0x1a   : > { %v301_v2 = vld [vmem:[%s288_s13] sm:$0xff]  ;;  %s449_s13 = sshll.u32 %s445_s11, 4  ;;  %s450_s13 = int_to_ptr.hbm [resolvable:$true] %s449_s13 }
  0x1b   : > { %309 = vst [vmem:[#allocation1] ss:$2 sm:$0xff] %v301_v2  ;;  %v401_v24 = vld [vmem:[%s297_s7] sm:$0x3]  ;;  %s697_s15 = sshra.s32 %s450_s13, 4  ;;  %s698_s15 = int_to_ptr.hbm [resolvable:$true] %s697_s15 }
  0x1c   : > { %v402_v30 = vperm.slane %v401_v24, 0  ;;  %v403_v31 = vperm.slane %v401_v24, 1  ;;  %s699_s17 = scalar_lea.hbm %s698_s15, 16  ;;  %p704_p1 = scmp.lt.s32.totalorder %s698_s15, %s973_s4 }
  0x1d   : > { %p700_p12 = scmp.ne.s32.totalorder %s698_s15, %s699_s17 }
  0x1e   : > { %vm404_vm2 = vcmp.eq.s32.totalorder %v400_v29, %v402_v30  ;;  %vm405_vm3 = vcmp.eq.s32.totalorder %v400_v29, %v403_v31 }
  0x1f   : > { %p701_p13 = pnand %p700_p12, %p866_p4 }
  0x21   : > { %p702_p0 = pneg %p701_p13 }
  0x22   : > { %v310_v4 = vld.sshfl [vmem:[#allocation1] sm:$0xff pattern:$0x75316420]  ;;  %v311_v5 = vld.sshfl [vmem:[#allocation1 + $0x8] sm:$0xff pattern:$0x75316420] }
  0x23   : > { %600 = vmatpush.msk.msra.mxu0 %vm316_vm0, %v310_v4  ;;  %602 = vmatpush.msk.msra.mxu1 %vm316_vm0, %v311_v5 }
  0x24   : > { %601 = vmatmul.msk.f32.vlgmr.msra.gmra.mxu0 %vm312_vm1, %v300_v3  ;;  %603 = vmatmul.msk.f32.vlgmr.msra.gmra.mxu1 %vm312_vm1, %v300_v3 }
  0x8a   : > { %v306_v6 = vpop.permute.xlu0 %305 }
  0xa1   : > { %v338_v7 = vpop.f32.mrf.mxu0  ;;  %v358_v8 = vpop.f32.mrf.mxu1 }
  0xa2   : > { %v339_v9 = vadd.f32 %v338_v7, %v306_v6  ;;  %v359_v10 = vadd.f32 %v358_v8, %v306_v6 }
  0xa4   : > { %v363_v11 = vrot.slane %v339_v9, 4  ;;  %v369_v12 = vrot.slane %v359_v10, 4  ;;  %361 = vst [vmem:[%s899_s24] sm:$0xff] %v339_v9  ;;  %v406_v32 = vsel %vm404_vm2, %v339_v9, 0.0  ;;  %v407_v34 = vsel %vm405_vm3, %v359_v10, 0.0 }
  0xa5   : > { %362 = vst [vmem:[%s899_s24 + $0x8] sm:$0xff] %v359_v10  ;;  %v408_v38 = vrot.slane %v406_v32, 4  ;;  %v414_v40 = vrot.slane %v407_v34, 4  ;;  %s703_s24 = scalar_lea.hbm %s973_s4, 32 }
  0xa6   : > { %v364_v13 = vmax.f32 %v339_v9, %v363_v11  ;;  %v370_v14 = vmax.f32 %v359_v10, %v369_v12  ;;  %p705_p2 = scmp.lt.s32.totalorder %s703_s24, %s699_s17 }
  0xa7   : > { %v409_v44 = vadd.f32 %v408_v38, %v406_v32  ;;  %v415_v46 = vadd.f32 %v414_v40, %v407_v34 }
  0xa8   : > { %v365_v15 = vrot.slane %v364_v13, 2  ;;  %v371_v16 = vrot.slane %v370_v14, 2  ;;  %p706_p3 = por %p705_p2, %p704_p1 }
  0xa9   : > { %v410_v50 = vrot.slane %v409_v44, 2  ;;  %v416_v52 = vrot.slane %v415_v46, 2 }
  0xaa   : > { %v366_v17 = vmax.f32 %v364_v13, %v365_v15  ;;  %v372_v18 = vmax.f32 %v370_v14, %v371_v16  ;;  %p707_p5 = pnand %p706_p3, %p702_p0 }
  0xab   : > { %v411_v54 = vadd.f32 %v410_v50, %v409_v44  ;;  %v417_v55 = vadd.f32 %v416_v52, %v415_v46 }
  0xac   : > { %v367_v19 = vrot.slane %v366_v17, 1  ;;  %v373_v20 = vrot.slane %v372_v18, 1 }
  0xad   : > { %v412_v56 = vrot.slane %v411_v54, 1  ;;  %v418_v58 = vrot.slane %v417_v55, 1 }
  0xae   : > { %v907_v21 = vmax.f32 %v366_v17, %v367_v19  ;;  %v909_v22 = vmax.f32 %v372_v18, %v373_v20 }
  0xb0   : > { %v375_v25 = vsub.f32 %v339_v9, %v907_v21  ;;  %v376_v26 = vsub.f32 %v359_v10, %v909_v22 }
  0xb2   : > { %v377_v27 = vmul.f32 1.442695, %v375_v25  ;;  %v379_v28 = vmul.f32 1.442695, %v376_v26 }
  0xb4   : > { %675 = vpow2.f32 %v377_v27 }
  0xb5   : > { %677 = vpow2.f32 %v379_v28 }
  0xba   : > { %v676_v33 = vpop.eup %675 }
  0xbb   : > { %v678_v35 = vpop.eup %677  ;;  %v381_v36 = vrot.slane %v676_v33, 4 }
  0xbc   : > { %v387_v37 = vrot.slane %v678_v35, 4 }
  0xbd   : > { %v382_v39 = vadd.f32 %v676_v33, %v381_v36 }
  0xbe   : > { %v388_v41 = vadd.f32 %v678_v35, %v387_v37 }
  0xbf   : > { %v383_v42 = vrot.slane %v382_v39, 2 }
  0xc0   : > { %v389_v43 = vrot.slane %v388_v41, 2 }
  0xc1   : > { %v384_v45 = vadd.f32 %v383_v42, %v382_v39 }
  0xc2   : > { %v390_v47 = vadd.f32 %v389_v43, %v388_v41 }
  0xc3   : > { %v385_v48 = vrot.slane %v384_v45, 1 }
  0xc4   : > { %v391_v49 = vrot.slane %v390_v47, 1 }
  0xc5   : > { %v386_v51 = vadd.f32 %v385_v48, %v384_v45 }
  0xc6   : > { %v392_v53 = vadd.f32 %v391_v49, %v390_v47 }
  0xc7   : > { %679 = vlog2.f32 %v386_v51 }
  0xc8   : > { %681 = vlog2.f32 %v392_v53 }
  0xcd   : > { %v680_v57 = vpop.eup %679 }
  0xce   : > { %v682_v59 = vpop.eup %681  ;;  %v394_v60 = vmul.f32 0.6931472, %v680_v57 }
  0xcf   : > { %710 = shalt.err (!%p707_p5)
}
  0xd0   : > { %613 = dma.vmem_to_hbm [thread:$0]  (%p866_p4), %s448_s12, 256, %s450_s13, %s427_s14   ;;  %v396_v61 = vmul.f32 0.6931472, %v682_v59  ;;  %v397_v62 = vadd.f32 %v394_v60, %v907_v21  ;;  %v413_v63 = vadd.f32 %v412_v56, %v411_v54  ;;  %v419_v1 = vadd.f32 %v418_v58, %v417_v55 }
  0xd1   : > { %s596_s8 = sshll.u32 %s896_s16, 3  ;;  %s608_s9 = sshll.u32 %s785_s21, 3 }
  0xd2   : > { %v398_v0 = vadd.f32 %v396_v61, %v909_v22  ;;  %v420_v2 = vsub.f32 %v397_v62, %v413_v63  ;;  %s460_s15 = scalar_lea.hbm %s974_s5, %s608_s9  ;;  %s279_s12 = scalar_lea.vmem [#allocation4], %s596_s8 }
  0xd3   : > { %s462_s13 = sshll.u32 %s279_s12, 4  ;;  %s464_s14 = sshll.u32 %s460_s15, 4  ;;  %s463_s13 = int_to_ptr.vmem [resolvable:$true] %s462_s13  ;;  %s465_s14 = int_to_ptr.hbm [resolvable:$true] %s464_s14 }
  0xd4   : > { %v421_v3 = vsub.f32 %v398_v0, %v419_v1  ;;  %s432_s17 = scalar_lea.sflag [#allocation5], %s896_s16  ;;  %s725_s25 = sshra.s32 %s465_s14, 4  ;;  %s726_s25 = int_to_ptr.hbm [resolvable:$true] %s725_s25 }
  0xd5   : > { %s727_s27 = scalar_lea.hbm %s726_s25, 8  ;;  %s731_s29 = scalar_lea.hbm %s974_s5, 16 }
  0xd6   : > { %v422_v4 = vadd.f32 %v421_v3, %v420_v2  ;;  %p728_p6 = scmp.ne.s32.totalorder %s726_s25, %s727_s27  ;;  %p732_p10 = scmp.lt.s32.totalorder %s726_s25, %s974_s5 }
  0xd7   : > { %p733_p11 = scmp.lt.s32.totalorder %s731_s29, %s727_s27 }
  0xd8   : > { %423 = vadd.xlane.f32.xlu0 %v422_v4  ;;  %p729_p7 = pnand %p728_p6, %p866_p4 }
  0xd9   : > { %p734_p12 = por %p733_p11, %p732_p10 }
  0xda   : > { %p730_p9 = pneg %p729_p7 }
  0xdc   : > { %p735_p13 = pnand %p734_p12, %p730_p9 }
 0x14b   : > { %v424_v5 = vpop.xlane.xlu0 %423 }
 0x14c   : > { %425 = vst [vmem:[%s279_s12] sm:$0xff] %v424_v5 }
 0x14d   : > { %738 = shalt.err (!%p735_p13)
}
 0x14e   : > { %614 = dma.vmem_to_hbm [thread:$0]  (%p866_p4), %s463_s13, 128, %s465_s14, %s432_s17  }
 0x14f PF: > { %p624_p0 = scmp.ge.s32.totalorder %s793_s23, 2  ;;  %s476_s16 = sand.u32 1, %s773_s18  }
 0x150   : > { %s477_s9 = scalar_lea.sflag [#allocation3], %s476_s16 }
 0x151   : > { %p618_p1 = pnand %p624_p0, %p873_p8 }
 0x153   : > { %p619_p2 = pneg %p618_p1 }
 0x155   : > { %764 = dma.done.wait (%p619_p2), %s477_s9, 256  }
 0x156   : > { %766 = vsyncadd (%p619_p2), %s477_s9, 4294967040  ;;  %s487_s10 = scalar_lea.sflag [#allocation5], %s476_s16 }
 0x157   : > { %768 = dma.done.wait (%p619_p2), %s487_s10, 128  }
 0x158   : > { %770 = vsyncadd (%p619_p2), %s487_s10, 4294967168  ;;  %s22_s23 = sadd.s32 1, %s793_s23   ;;  %s977_s18 = smov %s777_s19 }
 0x159   : > { %p19_p3 = scmp.ge.s32.totalorder %s22_s23, 4   ;;  %s978_s19 = smov %s781_s20 }
 0x15a   : > { %s979_s20 = smov %s879_s6  ;;  %s980_s21 = smov %s789_s22 }
 0x15b   : > { %s981_s22 = smov %s983_s26  ;;  %21 = sbr.rel (!%p19_p3) target bundleno = 6 (0x6), region = 91 }
 0x160   :  { %493 = vsyncpa [#allocation3], 1 }
 0x161   :  { %495 = vsyncpa [#allocation3 + $0x1], 1 }
 0x162   :  { %496 = vsyncpa [#allocation5], 1 }
 0x163   :  { %498 = vsyncpa [#allocation5 + $0x1], 1 }

</bundles_post_ra>
